<compile_context>
chip_gen: v7x
topology: tpu7x:2x2x1
jax: 0.10.0
libtpu: 0.0.40
codegen_flags: <defaults>
</compile_context>

<pallas_src>
import functools

import jax
import jax.numpy as jnp
from jax.experimental import pallas as pl
from jax.experimental.pallas import tpu as pltpu

LANE = 128        # lane width: feature dims padded (per layer) to this
ROW_PAD = 128     # node count padded to a multiple of this (lane/K dim of A)


def _round_up(x, m):
    return (x + m - 1) // m * m


def _pad2d(x, rows, cols, dtype=None):
    x = jnp.pad(x, ((0, rows - x.shape[0]), (0, cols - x.shape[1])))
    return x if dtype is None else x.astype(dtype)


# ---------------------------------------------------------------------------
# VMEM budgeting + row-tile selection.
# ---------------------------------------------------------------------------
def _vmem_estimate(tm, *, n_pad, f_in, lin_shapes, f_out, out_bytes, aggregate):
    """Rough per-call VMEM footprint in bytes (assumes double-buffered tiles)."""
    b = 0
    if aggregate:
        b += 2 * tm * n_pad * 2          # A row tile (bf16), double-buffered
        b += 2 * n_pad * f_in * 2        # resident H (bf16), worst case 2 buffers
        b += 2 * tm * f_in * 2           # H row tile (bf16) for the (1+eps)*h term
    else:
        b += 2 * tm * f_in * 2
    for din, dout in lin_shapes:
        b += 2 * (din * dout * 2 + dout * 4)   # weight (bf16) + bias (f32)
    b += 2 * tm * f_out * out_bytes            # output tile, double-buffered
    return b


def _choose_row_tile(n_pad, est_fn, budget=40 * 1024 * 1024):
    # Candidates are 128-multiples dividing n_pad; never degrade below 128.
    cands = [tm for tm in (512, 384, 256, 128) if tm <= n_pad and n_pad % tm == 0]
    if not cands:
        cands = [n_pad]
    for tm in cands:
        if est_fn(tm) <= budget:
            return tm
    return cands[-1]


# ---------------------------------------------------------------------------
# Generic kernel: optional sum-aggregation + eps, then a stack of Linear(+ReLU).
# ---------------------------------------------------------------------------
def _make_stack_kernel(n_lin, relu_flags, aggregate):
    def kernel(*refs):
        if aggregate:
            a_ref, hfull_ref, htile_ref, eps_ref = refs[:4]
            wb = refs[4:4 + 2 * n_lin]
            o_ref = refs[4 + 2 * n_lin]
            # Sum aggregation over neighbours on the MXU: bf16 x bf16 -> f32.
            agg = jnp.dot(a_ref[...], hfull_ref[...],
                          preferred_element_type=jnp.float32)
            x = (1.0 + eps_ref[0]) * htile_ref[...].astype(jnp.float32) + agg
        else:
            htile_ref = refs[0]
            wb = refs[1:1 + 2 * n_lin]
            o_ref = refs[1 + 2 * n_lin]
            x = htile_ref[...].astype(jnp.float32)
        for l in range(n_lin):
            w = wb[2 * l][...]                      # bf16 weight tile
            b = wb[2 * l + 1][...]                  # f32 bias row
            x = jnp.dot(x.astype(jnp.bfloat16), w,
                        preferred_element_type=jnp.float32) + b
            if relu_flags[l]:
                x = jnp.maximum(x, 0.0)
        o_ref[...] = x.astype(o_ref.dtype)
    return kernel


def _stack_call(h, ws, bs, *, adj=None, eps=None, relu_flags, out_dtype):
    """h: (n_pad, f_in) bf16; ws[i]: bf16 padded weights; bs[i]: (1, dout) f32."""
    n_pad, f_in = h.shape
    n_lin = len(ws)
    f_out = ws[-1].shape[1]
    aggregate = adj is not None

    est_fn = functools.partial(
        _vmem_estimate, n_pad=n_pad, f_in=f_in,
        lin_shapes=[w.shape for w in ws], f_out=f_out,
        out_bytes=jnp.dtype(out_dtype).itemsize, aggregate=aggregate)
    tm = _choose_row_tile(n_pad, est_fn)
    grid = (n_pad // tm,)

    in_specs, args = [], []
    if aggregate:
        in_specs.append(pl.BlockSpec((tm, n_pad), lambda i: (i, 0)))        # A row tile
        args.append(adj)
        in_specs.append(pl.BlockSpec((n_pad, f_in), lambda i: (0, 0)))      # resident H
        args.append(h)
        in_specs.append(pl.BlockSpec((tm, f_in), lambda i: (i, 0)))         # H row tile
        args.append(h)
        in_specs.append(pl.BlockSpec(memory_space=pltpu.MemorySpace.SMEM))  # eps scalar
        args.append(eps)
    else:
        in_specs.append(pl.BlockSpec((tm, f_in), lambda i: (i, 0)))
        args.append(h)
    for w, b in zip(ws, bs):
        in_specs.append(pl.BlockSpec(w.shape, lambda i: (0, 0)))
        args.append(w)
        in_specs.append(pl.BlockSpec(b.shape, lambda i: (0, 0)))
        args.append(b)

    # Only raise the scoped-VMEM limit when the estimated footprint needs it
    # (keeps the small/default path identical on all generations).
    est = est_fn(tm)
    cp_kwargs = dict(dimension_semantics=("parallel",))
    if est > 12 * 1024 * 1024:
        cp_kwargs["vmem_limit_bytes"] = int(min(est * 1.5, 56 * 1024 * 1024))

    kernel = _make_stack_kernel(n_lin, tuple(relu_flags), aggregate)
    return pl.pallas_call(
        kernel,
        out_shape=jax.ShapeDtypeStruct((n_pad, f_out), out_dtype),
        grid=grid,
        in_specs=in_specs,
        out_specs=pl.BlockSpec((tm, f_out), lambda i: (i, 0)),
        compiler_params=pltpu.CompilerParams(**cp_kwargs),
    )(*args)


# ---------------------------------------------------------------------------
# Parameters (shapes follow GIN.__init__); deterministic init.
# ---------------------------------------------------------------------------
def init_gin_params(key, in_feats, hid_feats, out_feats,
                    fun_num_layers, num_layers, num_hidden_layers,
                    input_dim, hidden_dim, output_dim):
    def mlp_stack(key, n_layers, d_in, d_hid, d_out):
        dims = [d_in] + [d_hid] * (n_layers - 1) + [d_out]
        ws, bs = [], []
        for i in range(n_layers):
            key, kw, kb = jax.random.split(key, 3)
            ws.append(jax.random.normal(kw, (dims[i], dims[i + 1]),
                                        jnp.float32) * 0.1)
            bs.append(jax.random.normal(kb, (dims[i + 1],), jnp.float32) * 0.01)
        return key, {"w": ws, "b": bs}

    gin_layers = []
    for i in range(1, num_hidden_layers + 1):
        d_in = in_feats if i == 1 else hid_feats
        d_out = out_feats if i == num_hidden_layers else hid_feats
        key, stack = mlp_stack(key, fun_num_layers, d_in, hid_feats, d_out)
        # Module uses init_eps=0 (learn_eps=True); use a nonzero value here to
        # exercise the (1+eps) path as if after training.
        gin_layers.append({"mlp": stack, "eps": jnp.float32(0.1 * i)})
    key, head = mlp_stack(key, num_layers, input_dim, hidden_dim, output_dim)
    return {"gin": gin_layers, "head": head}


# ---------------------------------------------------------------------------
# Forward pass (Pallas) and pure-JAX reference.
# ---------------------------------------------------------------------------
def gin_forward(params, adj, inputs):
    n = inputs.shape[0]
    n_pad = _round_up(n, ROW_PAD)
    out_dim = params["head"]["w"][-1].shape[1]

    # Adjacency in bf16: 0/1 values are exact; halves the dominant O(N^2) HBM stream.
    a_p = _pad2d(adj, n_pad, n_pad, jnp.bfloat16)

    def pad_stack(stack):
        ws = [_pad2d(w, _round_up(w.shape[0], LANE), _round_up(w.shape[1], LANE),
                     jnp.bfloat16) for w in stack["w"]]
        bs = [_pad2d(b[None, :], 1, _round_up(b.shape[0], LANE), jnp.float32)
              for b in stack["b"]]
        return ws, bs

    h = _pad2d(inputs, n_pad, _round_up(inputs.shape[1], LANE), jnp.bfloat16)

    gin_layers = params["gin"]
    head_ws, head_bs = pad_stack(params["head"])
    head_relus = [True] * (len(head_ws) - 1) + [False]

    for li, layer in enumerate(gin_layers):
        ws, bs = pad_stack(layer["mlp"])
        eps = jnp.reshape(layer["eps"].astype(jnp.float32), (1,))
        # MLP_fun inner ReLUs + the outer F.relu after GINConv.
        relu_flags = [True] * len(ws)
        if li == len(gin_layers) - 1:
            # Fuse the head MLP into the last GIN layer's call.
            ws = ws + head_ws
            bs = bs + head_bs
            relu_flags = relu_flags + head_relus
            out_dtype = jnp.float32
        else:
            out_dtype = jnp.bfloat16          # inter-layer H stays bf16 in HBM
        # h = relu(MLP_fun((1+eps)*h + A@h)); dropout(0.5) is identity in eval mode.
        h = _stack_call(h, ws, bs, adj=a_p, eps=eps,
                        relu_flags=relu_flags, out_dtype=out_dtype)

    if not gin_layers:  # degenerate config: head MLP only
        h = _stack_call(h, head_ws, head_bs,
                        relu_flags=head_relus, out_dtype=jnp.float32)

    return h[:n, :out_dim]


def gin_forward_ref(params, adj, inputs):
    h = inputs
    for layer in params["gin"]:
        z = (1.0 + layer["eps"]) * h + adj @ h
        ws, bs = layer["mlp"]["w"], layer["mlp"]["b"]
        for li, (w, b) in enumerate(zip(ws, bs)):
            z = z @ w + b
            if li < len(ws) - 1:
                z = jax.nn.relu(z)
        h = jax.nn.relu(z)
    ws, bs = params["head"]["w"], params["head"]["b"]
    z = h
    for li, (w, b) in enumerate(zip(ws, bs)):
        z = z @ w + b
        if li < len(ws) - 1:
            z = jax.nn.relu(z)
    return z


if __name__ == "__main__":
    key = jax.random.PRNGKey(0)

    # Small, module-consistent hyperparameters (out_feats == input_dim so the
    # head MLP composes with the last GIN layer, as the module requires).
    in_feats, hid_feats, out_feats = 8, 16, 16
    fun_num_layers, num_layers, num_hidden_layers = 2, 2, 2
    input_dim, hidden_dim, output_dim = 16, 32, 4

    key, kp, kx, ka = jax.random.split(key, 4)
    params = init_gin_params(kp, in_feats, hid_feats, out_feats,
                             fun_num_layers, num_layers, num_hidden_layers,
                             input_dim, hidden_dim, output_dim)

    num_nodes = 16
    inputs = jax.random.normal(kx, (num_nodes, in_feats), jnp.float32)
    adj = jax.random.bernoulli(ka, 0.3, (num_nodes, num_nodes)).astype(jnp.float32)

    out = gin_forward(params, adj, inputs)
    out = jax.block_until_ready(out)

    ref = gin_forward_ref(params, adj, inputs)
    assert out.shape == (num_nodes, output_dim), out.shape
    assert out.dtype == jnp.float32
    assert bool(jnp.allclose(out, ref, atol=2e-2, rtol=2e-2)), (
        float(jnp.max(jnp.abs(out - ref))))

    print("KERNEL_OK")
</pallas_src>

<mosaic_0001>
module attributes {stable_mosaic.version = 11 : i64} {
  func.func @kernel(%arg0: i32, %arg1: memref<128x128xbf16, #tpu.memory_space<vmem>>, %arg2: memref<128x128xbf16, #tpu.memory_space<vmem>>, %arg3: memref<128x128xbf16, #tpu.memory_space<vmem>>, %arg4: memref<1xf32, #tpu.memory_space<smem>>, %arg5: memref<128x128xbf16, #tpu.memory_space<vmem>>, %arg6: memref<1x128xf32, #tpu.memory_space<vmem>>, %arg7: memref<128x128xbf16, #tpu.memory_space<vmem>>, %arg8: memref<1x128xf32, #tpu.memory_space<vmem>>, %arg9: memref<128x128xbf16, #tpu.memory_space<vmem>>) attributes {dimension_semantics = [#tpu.dimension_semantics<parallel>], iteration_bounds = array<i64: 1>, scalar_prefetch = 0 : i64, scratch_operands = 0 : i64, tpu.core_type = #tpu.core_type<tc>, window_params = [{transform_indices = @transform_0, window_bounds = array<i64: 128, 128>}, {pipeline_mode = #tpu.pipeline_mode<synchronous>, transform_indices = @transform_1, window_bounds = array<i64: 128, 128>}, {transform_indices = @transform_2, window_bounds = array<i64: 128, 128>}, {transform_indices = @transform_3, window_bounds = array<i64: 1>}, {pipeline_mode = #tpu.pipeline_mode<synchronous>, transform_indices = @transform_4, window_bounds = array<i64: 128, 128>}, {pipeline_mode = #tpu.pipeline_mode<synchronous>, transform_indices = @transform_5, window_bounds = array<i64: 1, 128>}, {pipeline_mode = #tpu.pipeline_mode<synchronous>, transform_indices = @transform_6, window_bounds = array<i64: 128, 128>}, {pipeline_mode = #tpu.pipeline_mode<synchronous>, transform_indices = @transform_7, window_bounds = array<i64: 1, 128>}, {transform_indices = @transform_8, window_bounds = array<i64: 128, 128>}]} {
    %c0 = arith.constant 0 : index
    %c0_0 = arith.constant 0 : index
    %0 = vector.load %arg1[%c0, %c0_0] : memref<128x128xbf16, #tpu.memory_space<vmem>>, vector<128x128xbf16>
    %c0_1 = arith.constant 0 : index
    %c0_2 = arith.constant 0 : index
    %1 = vector.load %arg2[%c0_1, %c0_2] : memref<128x128xbf16, #tpu.memory_space<vmem>>, vector<128x128xbf16>
    %cst = arith.constant dense<0.000000e+00> : vector<128x128xf32>
    %2 = tpu.matmul %0, %1, %cst {dimension_numbers = #tpu.dot_dimension_numbers<[1], [0], [0], [1], [0, 0, 1, 1], [], []>} : vector<128x128xbf16>, vector<128x128xbf16>, vector<128x128xf32> -> vector<128x128xf32>
    %c0_3 = arith.constant 0 : index
    %3 = memref.load %arg4[%c0_3] : memref<1xf32, #tpu.memory_space<smem>>
    %cst_4 = arith.constant 1.000000e+00 : f32
    %4 = arith.addf %cst_4, %3 : f32
    %c0_5 = arith.constant 0 : index
    %c0_6 = arith.constant 0 : index
    %5 = vector.load %arg3[%c0_5, %c0_6] : memref<128x128xbf16, #tpu.memory_space<vmem>>, vector<128x128xbf16>
    %6 = arith.extf %5 : vector<128x128xbf16> to vector<128x128xf32>
    %7 = vector.broadcast %4 : f32 to vector<128x128xf32>
    %8 = arith.mulf %7, %6 : vector<128x128xf32>
    %9 = arith.addf %8, %2 : vector<128x128xf32>
    %c0_7 = arith.constant 0 : index
    %c0_8 = arith.constant 0 : index
    %10 = vector.load %arg5[%c0_7, %c0_8] : memref<128x128xbf16, #tpu.memory_space<vmem>>, vector<128x128xbf16>
    %c0_9 = arith.constant 0 : index
    %c0_10 = arith.constant 0 : index
    %11 = vector.load %arg6[%c0_9, %c0_10] : memref<1x128xf32, #tpu.memory_space<vmem>>, vector<1x128xf32>
    %12 = arith.truncf %9 : vector<128x128xf32> to vector<128x128xbf16>
    %cst_11 = arith.constant dense<0.000000e+00> : vector<128x128xf32>
    %13 = tpu.matmul %12, %10, %cst_11 {dimension_numbers = #tpu.dot_dimension_numbers<[1], [0], [0], [1], [0, 0, 1, 1], [], []>} : vector<128x128xbf16>, vector<128x128xbf16>, vector<128x128xf32> -> vector<128x128xf32>
    %14 = vector.broadcast %11 : vector<1x128xf32> to vector<128x128xf32>
    %15 = arith.addf %13, %14 : vector<128x128xf32>
    %cst_12 = arith.constant 0.000000e+00 : f32
    %16 = vector.broadcast %cst_12 : f32 to vector<128x128xf32>
    %17 = arith.maximumf %15, %16 : vector<128x128xf32>
    %c0_13 = arith.constant 0 : index
    %c0_14 = arith.constant 0 : index
    %18 = vector.load %arg7[%c0_13, %c0_14] : memref<128x128xbf16, #tpu.memory_space<vmem>>, vector<128x128xbf16>
    %c0_15 = arith.constant 0 : index
    %c0_16 = arith.constant 0 : index
    %19 = vector.load %arg8[%c0_15, %c0_16] : memref<1x128xf32, #tpu.memory_space<vmem>>, vector<1x128xf32>
    %20 = arith.truncf %17 : vector<128x128xf32> to vector<128x128xbf16>
    %cst_17 = arith.constant dense<0.000000e+00> : vector<128x128xf32>
    %21 = tpu.matmul %20, %18, %cst_17 {dimension_numbers = #tpu.dot_dimension_numbers<[1], [0], [0], [1], [0, 0, 1, 1], [], []>} : vector<128x128xbf16>, vector<128x128xbf16>, vector<128x128xf32> -> vector<128x128xf32>
    %22 = vector.broadcast %19 : vector<1x128xf32> to vector<128x128xf32>
    %23 = arith.addf %21, %22 : vector<128x128xf32>
    %cst_18 = arith.constant 0.000000e+00 : f32
    %24 = vector.broadcast %cst_18 : f32 to vector<128x128xf32>
    %25 = arith.maximumf %23, %24 : vector<128x128xf32>
    %26 = arith.truncf %25 : vector<128x128xf32> to vector<128x128xbf16>
    %c0_19 = arith.constant 0 : index
    %c0_20 = arith.constant 0 : index
    %27 = vector.load %arg9[%c0_19, %c0_20] : memref<128x128xbf16, #tpu.memory_space<vmem>>, vector<128x128xbf16>
    tpu.vector_store %arg9[%c0_19, %c0_20], %26 {strides = array<i32>} : memref<128x128xbf16, #tpu.memory_space<vmem>>, vector<128x128xbf16>,
    return
  }
  func.func @transform_0(%arg0: i32) -> (i32, i32) {
    %c0_i32 = arith.constant 0 : i32
    %c0_i32_0 = arith.constant 0 : i32
    return %arg0, %c0_i32 : i32, i32
  }
  func.func @transform_1(%arg0: i32) -> (i32, i32) {
    %c0_i32 = arith.constant 0 : i32
    %c0_i32_0 = arith.constant 0 : i32
    %c0_i32_1 = arith.constant 0 : i32
    return %c0_i32, %c0_i32_0 : i32, i32
  }
  func.func @transform_2(%arg0: i32) -> (i32, i32) {
    %c0_i32 = arith.constant 0 : i32
    %c0_i32_0 = arith.constant 0 : i32
    return %arg0, %c0_i32 : i32, i32
  }
  func.func @transform_3(%arg0: i32) -> i32 {
    %c0_i32 = arith.constant 0 : i32
    %c0_i32_0 = arith.constant 0 : i32
    return %c0_i32 : i32
  }
  func.func @transform_4(%arg0: i32) -> (i32, i32) {
    %c0_i32 = arith.constant 0 : i32
    %c0_i32_0 = arith.constant 0 : i32
    %c0_i32_1 = arith.constant 0 : i32
    return %c0_i32, %c0_i32_0 : i32, i32
  }
  func.func @transform_5(%arg0: i32) -> (i32, i32) {
    %c0_i32 = arith.constant 0 : i32
    %c0_i32_0 = arith.constant 0 : i32
    %c0_i32_1 = arith.constant 0 : i32
    return %c0_i32, %c0_i32_0 : i32, i32
  }
  func.func @transform_6(%arg0: i32) -> (i32, i32) {
    %c0_i32 = arith.constant 0 : i32
    %c0_i32_0 = arith.constant 0 : i32
    %c0_i32_1 = arith.constant 0 : i32
    return %c0_i32, %c0_i32_0 : i32, i32
  }
  func.func @transform_7(%arg0: i32) -> (i32, i32) {
    %c0_i32 = arith.constant 0 : i32
    %c0_i32_0 = arith.constant 0 : i32
    %c0_i32_1 = arith.constant 0 : i32
    return %c0_i32, %c0_i32_0 : i32, i32
  }
  func.func @transform_8(%arg0: i32) -> (i32, i32) {
    %c0_i32 = arith.constant 0 : i32
    %c0_i32_0 = arith.constant 0 : i32
    return %arg0, %c0_i32 : i32, i32
  }
}

</mosaic_0001>

<bundles_post_ra>
// kernel: tpu_custom_call.1
= control target key start
LH: loop header
LB: loop body
LE: loop exit
PB: predicated region body
PF: predicated region fallthrough
CT: control target
= control target key end

     0   :  { %14 = vsyncpa [#allocation4], 0  ;;  %s1581_s0 = inlined_call_operand.hbm [shape: bf16[128,128], index: 0, kind: input, shape index: {}]   ;;  %s1582_s1 = inlined_call_operand.hbm [shape: bf16[128,128], index: 1, kind: input, shape index: {}]   ;;  %s1583_s2 = inlined_call_operand.hbm [shape: bf16[128,128], index: 2, kind: input, shape index: {}]   ;;  %s1584_s3 = inlined_call_operand.<no memory space> [shape: f32[1], index: 3, kind: input, shape index: {}]   ;;  %s1585_s4 = inlined_call_operand.hbm [shape: bf16[128,128], index: 4, kind: input, shape index: {}]   ;;  %s1586_s5 = inlined_call_operand.vmem [shape: f32[1,128], index: 5, kind: input, shape index: {}]   ;;  %s1587_s6 = inlined_call_operand.hbm [shape: bf16[128,128], index: 6, kind: input, shape index: {}]   ;;  %s1588_s7 = inlined_call_operand.vmem [shape: f32[1,128], index: 7, kind: input, shape index: {}]   ;;  %s1589_s8 = inlined_call_operand.hbm [shape: bf16[128,128], index: 8, kind: output, shape index: {}]  }
   0x1   :  { %15 = vsyncpa [#allocation7], 0 }
   0x2   :  { %16 = vsyncpa [#allocation10], 0 }
   0x3   :  { %17 = vsyncpa [#allocation5], 0  ;;  %s1367_s27 = smov [#allocation6]   ;;  %s1368_s29 = smov [#allocation9]  }
   0x4   :  { %s35_s28 = sshll.u32 %s1367_s27, 4  ;;  %s61_s30 = sshll.u32 %s1368_s29, 4  ;;  %s36_s28 = int_to_ptr.vmem [resolvable:$true] %s35_s28  ;;  %s1420_s30 = int_to_ptr.vmem [resolvable:$true] %s61_s30 }
   0x5   :  { %s1227_s11 = scalar_lea.hbm %s1582_s1, 1024 }
   0x6   :  { %p1228_p0 = scmp.ne.s32.totalorder %s1582_s1, %s1227_s11  ;;  %p1231_p1 = scmp.lt.u32.totalorder %s1227_s11, %s1582_s1 }
   0x8   :  { %p1233_p2 = pnand %p1231_p1, %p1228_p0 }
   0xa   :  { %1236 = shalt.err (!%p1233_p2)
}
   0xb   :  { %s1237_s16 = scalar_lea.vmem %s36_s28, 1024  ;;  %p1242_p4 = scmp.lt.s32.totalorder %s36_s28, %s36_s28 }
   0xc   :  { %p1238_p3 = scmp.ne.s32.totalorder %s36_s28, %s1237_s16  ;;  %p1243_p5 = scmp.lt.s32.totalorder %s1237_s16, %s1237_s16 }
   0xe   :  { %p1244_p6 = por %p1243_p5, %p1242_p4 }
  0x10   :  { %p1245_p7 = pnand %p1244_p6, %p1238_p3 }
  0x12   :  { %1248 = shalt.err (!%p1245_p7)
}
  0x13   :  { %s1369_s17 = smov 64   ;;  %s1370_s18 = smov 4  }
  0x14   :  { %41 = dma.hbm_to_vmem [thread:$0]  %s1582_s1, 1024, %s36_s28, [#allocation7], %s1369_s17, %s1369_s17, %s1370_s18  }
  0x15   :  { %s1249_s23 = scalar_lea.hbm %s1585_s4, 1024 }
  0x16   :  { %p1250_p8 = scmp.ne.s32.totalorder %s1585_s4, %s1249_s23  ;;  %p1253_p9 = scmp.lt.u32.totalorder %s1249_s23, %s1585_s4 }
  0x18   :  { %p1255_p10 = pnand %p1253_p9, %p1250_p8 }
  0x1a   :  { %1258 = shalt.err (!%p1255_p10)
}
  0x1b   :  { %s1259_s29 = scalar_lea.vmem %s1420_s30, 1024  ;;  %p1264_p12 = scmp.lt.s32.totalorder %s1420_s30, %s1420_s30 }
  0x1c   :  { %p1260_p11 = scmp.ne.s32.totalorder %s1420_s30, %s1259_s29  ;;  %p1265_p13 = scmp.lt.s32.totalorder %s1259_s29, %s1259_s29 }
  0x1e   :  { %p1266_p0 = por %p1265_p13, %p1264_p12 }
  0x20   :  { %p1267_p1 = pnand %p1266_p0, %p1260_p11 }
  0x22   :  { %1270 = shalt.err (!%p1267_p1)
}
  0x23   :  { %67 = dma.hbm_to_vmem [thread:$0]  %s1585_s4, 1024, %s1420_s30, [#allocation10], %s1369_s17, %s1369_s17, %s1370_s18  }
  0x24   :  { %s1371_s9 = smov [#allocation3]   ;;  %s1372_s11 = smov [#allocation8]  }
  0x25   :  { %s23_s10 = sshll.u32 %s1371_s9, 4  ;;  %s47_s12 = sshll.u32 %s1372_s11, 4  ;;  %s24_s10 = int_to_ptr.vmem [resolvable:$true] %s23_s10  ;;  %s1457_s12 = int_to_ptr.vmem [resolvable:$true] %s47_s12 }
  0x26   :  { %s1271_s15 = scalar_lea.hbm %s1581_s0, 1024 }
  0x27   :  { %p1272_p2 = scmp.ne.s32.totalorder %s1581_s0, %s1271_s15  ;;  %p1275_p3 = scmp.lt.u32.totalorder %s1271_s15, %s1581_s0 }
  0x29   :  { %p1277_p4 = pnand %p1275_p3, %p1272_p2 }
  0x2b   :  { %1280 = shalt.err (!%p1277_p4)
}
  0x2c   :  { %s1281_s4 = scalar_lea.vmem %s24_s10, 1024  ;;  %p1286_p6 = scmp.lt.s32.totalorder %s24_s10, %s24_s10 }
  0x2d   :  { %p1282_p5 = scmp.ne.s32.totalorder %s24_s10, %s1281_s4  ;;  %p1287_p7 = scmp.lt.s32.totalorder %s1281_s4, %s1281_s4 }
  0x2f   :  { %p1288_p8 = por %p1287_p7, %p1286_p6 }
  0x31   :  { %p1289_p9 = pnand %p1288_p8, %p1282_p5 }
  0x33   :  { %1292 = shalt.err (!%p1289_p9)
}
  0x34   :  { %29 = dma.hbm_to_vmem [thread:$0]  %s1581_s0, 1024, %s24_s10, [#allocation4], %s1369_s17, %s1369_s17, %s1370_s18  }
  0x35   :  { %s1293_s25 = scalar_lea.hbm %s1583_s2, 1024 }
  0x36   :  { %p1294_p10 = scmp.ne.s32.totalorder %s1583_s2, %s1293_s25  ;;  %p1297_p11 = scmp.lt.u32.totalorder %s1293_s25, %s1583_s2 }
  0x38   :  { %p1299_p12 = pnand %p1297_p11, %p1294_p10 }
  0x3a   :  { %1302 = shalt.err (!%p1299_p12)
}
  0x3b   :  { %s1303_s28 = scalar_lea.vmem %s1457_s12, 1024  ;;  %p1308_p0 = scmp.lt.s32.totalorder %s1457_s12, %s1457_s12 }
  0x3c   :  { %p1304_p13 = scmp.ne.s32.totalorder %s1457_s12, %s1303_s28  ;;  %p1309_p1 = scmp.lt.s32.totalorder %s1303_s28, %s1303_s28 }
  0x3e   :  { %p1310_p2 = por %p1309_p1, %p1308_p0 }
  0x40   :  { %p1311_p3 = pnand %p1310_p2, %p1304_p13 }
  0x42   :  { %1314 = shalt.err (!%p1311_p3)
}
  0x43   :  { %53 = dma.hbm_to_vmem [thread:$0]  %s1583_s2, 1024, %s1457_s12, [#allocation7], %s1369_s17, %s1369_s17, %s1370_s18  }
  0x44   :  { %s1373_s10 = smov [#allocation11]   ;;  %s1315_s15 = scalar_lea.hbm %s1587_s6, 1024 }
  0x45   :  { %s75_s11 = sshll.u32 %s1373_s10, 4  ;;  %p1316_p4 = scmp.ne.s32.totalorder %s1587_s6, %s1315_s15  ;;  %s76_s11 = int_to_ptr.vmem [resolvable:$true] %s75_s11 }
  0x46   :  { %p1319_p5 = scmp.lt.u32.totalorder %s1315_s15, %s1587_s6 }
  0x48   :  { %p1321_p6 = pnand %p1319_p5, %p1316_p4 }
  0x4a   :  { %1324 = shalt.err (!%p1321_p6)
}
  0x4b   :  { %s1325_s4 = scalar_lea.vmem %s76_s11, 1024  ;;  %p1330_p8 = scmp.lt.s32.totalorder %s76_s11, %s76_s11 }
  0x4c   :  { %p1326_p7 = scmp.ne.s32.totalorder %s76_s11, %s1325_s4  ;;  %p1331_p9 = scmp.lt.s32.totalorder %s1325_s4, %s1325_s4 }
  0x4e   :  { %p1332_p10 = por %p1331_p9, %p1330_p8 }
  0x50   :  { %p1333_p11 = pnand %p1332_p10, %p1326_p7 }
  0x52   :  { %1336 = shalt.err (!%p1333_p11)
}
  0x53   :  { %81 = dma.hbm_to_vmem [thread:$0]  %s1587_s6, 1024, %s76_s11, [#allocation10], %s1369_s17, %s1369_s17, %s1370_s18  }
  0x54   :  { %1359 = dma.done.wait [#allocation4], 1024  }
  0x55   :  { %1360 = vsyncadd [#allocation4], 4294966272 }
  0x56   :  { %1361 = dma.done.wait [#allocation7], 2048  }
  0x57   :  { %1362 = vsyncadd [#allocation7], 4294965248 }
  0x58   :  { %1363 = dma.done.wait [#allocation10], 2048  }
  0x59   :  { %1364 = vsyncadd [#allocation10], 4294965248  ;;  %v1195_v0 = vld [vmem:[#allocation6] sm:$0xff]   ;;  %v1196_v1 = vld [vmem:[#allocation6 + $0x8] sm:$0xff]   ;;  %s326_s22 = sadd.f32 1.0, %s1584_s3 }
  0x5a   :  { %1075 = vmatprep.subr.bf16.mxu0 %v1195_v0  ;;  %v1197_v2 = vld [vmem:[#allocation6 + $0x10] sm:$0xff]   ;;  %v1198_v3 = vld [vmem:[#allocation6 + $0x18] sm:$0xff]   ;;  %v1203_v4 = vld [vmem:[#allocation3] sm:$0xff]  }
  0x5b   :  { %1076 = vmatpush3.bf16.msra.mxu0 %v1195_v0  ;;  %1091 = vmatprep.mubr.bf16.mxu0 %v1203_v4  ;;  %v1199_v5 = vld [vmem:[#allocation6 + $0x20] sm:$0xff]   ;;  %v1200_v6 = vld [vmem:[#allocation6 + $0x28] sm:$0xff]   ;;  %v1201_v9 = vld [vmem:[#allocation6 + $0x30] sm:$0xff]   ;;  %v1532_v34 = vstv %s326_s22 }
  0x5c   :  { %1077 = vmatprep.subr.bf16.mxu0 %v1196_v1  ;;  %v1211_v7 = vld [vmem:[#allocation9] sm:$0xff]   ;;  %v1212_v8 = vld [vmem:[#allocation9 + $0x8] sm:$0xff]   ;;  %v1213_v10 = vld [vmem:[#allocation9 + $0x10] sm:$0xff]  }
  0x5d   :  { %1107 = vmatprep.subr.bf16.mxu1 %v1211_v7  ;;  %v1202_v11 = vld [vmem:[#allocation6 + $0x38] sm:$0xff]   ;;  %v1215_v13 = vld [vmem:[#allocation9 + $0x20] sm:$0xff]   ;;  %v1204_v14 = vld [vmem:[#allocation3 + $0x8] sm:$0xff]  }
  0x5e   :  { %1108 = vmatpush3.bf16.msra.mxu1 %v1211_v7  ;;  %v1214_v12 = vld [vmem:[#allocation9 + $0x18] sm:$0xff]   ;;  %v1205_v15 = vld [vmem:[#allocation3 + $0x10] sm:$0xff]   ;;  %v1216_v16 = vld [vmem:[#allocation9 + $0x28] sm:$0xff]  }
  0x5f   :  { %1078 = vmatpush3.bf16.msra.mxu0 %v1196_v1  ;;  %1109 = vmatprep.subr.bf16.mxu1 %v1212_v8  ;;  %v1206_v17 = vld [vmem:[#allocation3 + $0x18] sm:$0xff]   ;;  %v1207_v18 = vld [vmem:[#allocation3 + $0x20] sm:$0xff]   ;;  %v1208_v19 = vld [vmem:[#allocation3 + $0x28] sm:$0xff]  }
  0x60   :  { %1079 = vmatprep.subr.bf16.mxu0 %v1197_v2  ;;  %v1209_v20 = vld [vmem:[#allocation3 + $0x30] sm:$0xff]   ;;  %v1210_v21 = vld [vmem:[#allocation3 + $0x38] sm:$0xff]   ;;  %v1219_v24 = vld [vmem:[#allocation11] sm:$0xff]  }
  0x61   :  { %v1217_v22 = vld [vmem:[#allocation9 + $0x30] sm:$0xff]   ;;  %v1218_v23 = vld [vmem:[#allocation9 + $0x38] sm:$0xff]   ;;  %v1509_v25 = vld [vmem:[#allocation11 + $0x8] sm:$0xff]  }
  0x62   :  { %1110 = vmatpush3.bf16.msra.mxu1 %v1212_v8  ;;  %v1512_v26 = vld [vmem:[#allocation11 + $0x10] sm:$0xff]   ;;  %v1516_v27 = vld [vmem:[#allocation11 + $0x18] sm:$0xff]   ;;  %v1520_v28 = vld [vmem:[#allocation11 + $0x20] sm:$0xff]  }
  0x63   :  { %1080 = vmatpush3.bf16.msra.mxu0 %v1197_v2  ;;  %1111 = vmatprep.subr.bf16.mxu1 %v1213_v10  ;;  %v1524_v29 = vld [vmem:[#allocation11 + $0x28] sm:$0xff]   ;;  %v942_v31 = vld [vmem:[#allocation8] sm:$0xff]   ;;  %v1015_v42 = vld [vmem:[#allocation8 + $0x18] sm:$0xff]  }
  0x64   :  { %1081 = vmatprep.subr.bf16.mxu0 %v1198_v3  ;;  %v1013_v30 = vld [vmem:[#allocation8 + $0x8] sm:$0xff]   ;;  %v943_v35 = vunpack.c.l.bf16 %v942_v31  ;;  %v944_v36 = vunpack.c.h.bf16 %v942_v31  ;;  %v1014_v44 = vld [vmem:[#allocation8 + $0x10] sm:$0xff]   ;;  %v955_v49 = vunpack.c.l.bf16 %v1015_v42  ;;  %v956_v50 = vunpack.c.h.bf16 %v1015_v42  ;;  %v1016_v0 = vld [vmem:[#allocation8 + $0x20] sm:$0xff]  }
  0x65   :  { %v947_v32 = vunpack.c.l.bf16 %v1013_v30  ;;  %v948_v33 = vunpack.c.h.bf16 %v1013_v30  ;;  %v951_v53 = vunpack.c.l.bf16 %v1014_v44  ;;  %v952_v54 = vunpack.c.h.bf16 %v1014_v44  ;;  %v1017_v62 = vld [vmem:[#allocation8 + $0x28] sm:$0xff]  }
  0x66   :  { %1112 = vmatpush3.bf16.msra.mxu1 %v1213_v10  ;;  %v360_v40 = vmul.f32 %v943_v35, %v1532_v34  ;;  %v361_v41 = vmul.f32 %v944_v36, %v1532_v34  ;;  %v366_v57 = vmul.f32 %v955_v49, %v1532_v34  ;;  %v367_v58 = vmul.f32 %v956_v50, %v1532_v34  ;;  %v1225_v50 = vld [vmem:[#allocation11 + $0x30] sm:$0xff]  }
  0x67   :  { %1082 = vmatpush3.bf16.msra.mxu0 %v1198_v3  ;;  %1113 = vmatprep.subr.bf16.mxu1 %v1214_v12  ;;  %v362_v37 = vmul.f32 %v947_v32, %v1532_v34  ;;  %v363_v38 = vmul.f32 %v948_v33, %v1532_v34  ;;  %v364_v60 = vmul.f32 %v951_v53, %v1532_v34  ;;  %v960_v10 = vunpack.c.h.bf16 %v1016_v0 }
  0x68   :  { %1083 = vmatprep.subr.bf16.mxu0 %v1199_v5  ;;  %v365_v61 = vmul.f32 %v952_v54, %v1532_v34 }
  0x6a   :  { %1114 = vmatpush3.bf16.msra.mxu1 %v1214_v12 }
  0x6b   :  { %1084 = vmatpush3.bf16.msra.mxu0 %v1199_v5  ;;  %1115 = vmatprep.subr.bf16.mxu1 %v1215_v13  ;;  %v963_v5 = vunpack.c.l.bf16 %v1017_v62 }
  0x6c   :  { %1085 = vmatprep.subr.bf16.mxu0 %v1200_v6 }
  0x6e   :  { %1116 = vmatpush3.bf16.msra.mxu1 %v1215_v13  ;;  %v370_v13 = vmul.f32 %v963_v5, %v1532_v34 }
  0x6f   :  { %1086 = vmatpush3.bf16.msra.mxu0 %v1200_v6  ;;  %1117 = vmatprep.subr.bf16.mxu1 %v1216_v16  ;;  %v964_v6 = vunpack.c.h.bf16 %v1017_v62 }
  0x70   :  { %1087 = vmatprep.subr.bf16.mxu0 %v1201_v9 }
  0x72   :  { %1118 = vmatpush3.bf16.msra.mxu1 %v1216_v16 }
  0x73   :  { %1088 = vmatpush3.bf16.msra.mxu0 %v1201_v9  ;;  %1119 = vmatprep.subr.bf16.mxu1 %v1217_v22  ;;  %v959_v9 = vunpack.c.l.bf16 %v1016_v0 }
  0x74   :  { %1089 = vmatprep.subr.bf16.mxu0 %v1202_v11 }
  0x75   :  { %v368_v16 = vmul.f32 %v959_v9, %v1532_v34 }
  0x76   :  { %1120 = vmatpush3.bf16.msra.mxu1 %v1217_v22 }
  0x77   :  { %1090 = vmatpush3.bf16.msra.mxu0 %v1202_v11  ;;  %1121 = vmatprep.subr.bf16.mxu1 %v1218_v23 }
  0x78   :  { %1139 = vmatprep.subr.bf16.mxu0 %v1219_v24 }
  0x7a   :  { %1092 = vmatmul.mubr.bf16.vlgmr.msra.gmra.mrb[0].mxu0 %v1204_v14  ;;  %1122 = vmatpush3.bf16.msra.mxu1 %v1218_v23  ;;  %v371_v14 = vmul.f32 %v964_v6, %v1532_v34 }
  0x7b   :  { %1095 = vmatprep.mubr.bf16.mxu0 %v1205_v15  ;;  %1171 = vmatprep.subr.bf16.mxu1 %v1219_v24 }
  0x7c   :  { %1140 = vmatpush3.bf16.msra.mxu0 %v1219_v24 }
  0x7d   :  { %1141 = vmatprep.subr.bf16.mxu0 %v1509_v25 }
  0x80   :  { %1142 = vmatpush3.bf16.msra.mxu0 %v1509_v25 }
  0x81   :  { %1143 = vmatprep.subr.bf16.mxu0 %v1512_v26 }
  0x82   :  { %1096 = vmatmul.mubr.bf16.gmra.mrb[4].mxu0 %v1206_v17  ;;  %v369_v17 = vmul.f32 %v960_v10, %v1532_v34 }
  0x83   :  { %1099 = vmatprep.mubr.bf16.mxu0 %v1207_v18  ;;  %v1019_v18 = vld [vmem:[#allocation8 + $0x38] sm:$0xff]  }
  0x84   :  { %1144 = vmatpush3.bf16.msra.mxu0 %v1512_v26  ;;  %v972_v30 = vunpack.c.h.bf16 %v1019_v18 }
  0x85   :  { %1145 = vmatprep.subr.bf16.mxu0 %v1516_v27 }
  0x88   :  { %1146 = vmatpush3.bf16.msra.mxu0 %v1516_v27 }
  0x89   :  { %1147 = vmatprep.subr.bf16.mxu0 %v1520_v28 }
  0x8a   :  { %1100 = vmatmul.mubr.bf16.gmra.mrb[8].mxu0 %v1208_v19 }
  0x8b   :  { %1103 = vmatprep.mubr.bf16.mxu0 %v1209_v20  ;;  %v1018_v20 = vld [vmem:[#allocation8 + $0x30] sm:$0xff]  }
  0x8c   :  { %1148 = vmatpush3.bf16.msra.mxu0 %v1520_v28  ;;  %v967_v33 = vunpack.c.l.bf16 %v1018_v20  ;;  %v968_v35 = vunpack.c.h.bf16 %v1018_v20 }
  0x8d   :  { %1149 = vmatprep.subr.bf16.mxu0 %v1524_v29 }
  0x90   :  { %1150 = vmatpush3.bf16.msra.mxu0 %v1524_v29 }
  0x91   :  { %1151 = vmatprep.subr.bf16.mxu0 %v1225_v50 }
  0x92   :  { %1104 = vmatmul.mubr.bf16.gmra.mrb[12].mxu0 %v1210_v21 }
  0x94   :  { %1152 = vmatpush3.bf16.msra.mxu0 %v1225_v50 }
 0x14d   :  { %v1093_v39 = vpop.f32.mrb[0].mxu0 }
 0x14e   :  { %v262_v43 = vpop.f32.mrb[1].mxu0  ;;  %v378_v46 = vadd.f32 %v1093_v39, %v362_v37  ;;  %v375_v39 = vmul.f32 %v972_v30, %v1532_v34 }
 0x14f   :  { %v1094_v45 = vpop.f32.mrb[2].mxu0  ;;  %v376_v51 = vadd.f32 %v360_v40, %v262_v43  ;;  %v372_v40 = vmul.f32 %v967_v33, %v1532_v34 }
 0x150   :  { %v379_v47 = vadd.f32 %v1094_v45, %v363_v38  ;;  %v265_v48 = vpop.f32.mrb[3].mxu0 }
 0x151   :  { %v377_v52 = vadd.f32 %v361_v41, %v265_v48  ;;  %v373_v41 = vmul.f32 %v968_v35, %v1532_v34 }
 0x152   :  { %v410_v55 = vpack.c.bf16 %v379_v47, %v378_v46 }
 0x153   :  { %v409_v56 = vpack.c.bf16 %v377_v52, %v376_v51 }
 0x155   :  { %v1097_v59 = vpop.f32.mrb[4].mxu0  ;;  %1123 = vmatprep.mubr.bf16.mxu1 %v409_v56 }
 0x156   :  { %v278_v63 = vpop.f32.mrb[5].mxu0  ;;  %1124 = vmatmul.mubr.bf16.vlgmr.msra.gmra.mrb[0].mxu1 %v410_v55  ;;  %v382_v2 = vadd.f32 %v1097_v59, %v366_v57 }
 0x157   :  { %v1098_v1 = vpop.f32.mrb[6].mxu0  ;;  %1179 = vmatpush3.bf16.msra.mxu1 %v1219_v24  ;;  %v380_v7 = vadd.f32 %v364_v60, %v278_v63 }
 0x158   :  { %v383_v3 = vadd.f32 %v1098_v1, %v367_v58  ;;  %v281_v4 = vpop.f32.mrb[7].mxu0  ;;  %1172 = vmatprep.subr.bf16.mxu1 %v1509_v25 }
 0x159   :  { %v381_v8 = vadd.f32 %v365_v61, %v281_v4 }
 0x15a   :  { %v412_v11 = vpack.c.bf16 %v383_v3, %v382_v2 }
 0x15b   :  { %v411_v12 = vpack.c.bf16 %v381_v8, %v380_v7  ;;  %1180 = vmatpush3.bf16.msra.mxu1 %v1509_v25  ;;  %v971_v25 = vunpack.c.l.bf16 %v1019_v18 }
 0x15c   :  { %1173 = vmatprep.subr.bf16.mxu1 %v1512_v26 }
 0x15d   :  { %v1101_v15 = vpop.f32.mrb[8].mxu0  ;;  %1127 = vmatprep.mubr.bf16.mxu1 %v411_v12  ;;  %v374_v38 = vmul.f32 %v971_v25, %v1532_v34  ;;  %v1226_v34 = vld [vmem:[#allocation11 + $0x38] sm:$0xff]  }
 0x15e   :  { %v294_v19 = vpop.f32.mrb[9].mxu0  ;;  %1128 = vmatmul.mubr.bf16.gmra.mrb[4].mxu1 %v412_v11  ;;  %v386_v22 = vadd.f32 %v1101_v15, %v370_v13  ;;  %1153 = vmatprep.subr.bf16.mxu0 %v1226_v34 }
 0x15f   :  { %v1102_v21 = vpop.f32.mrb[10].mxu0  ;;  %1181 = vmatpush3.bf16.msra.mxu1 %v1512_v26  ;;  %v384_v31 = vadd.f32 %v368_v16, %v294_v19  ;;  %1154 = vmatpush3.bf16.msra.mxu0 %v1226_v34 }
 0x160   :  { %v387_v23 = vadd.f32 %v1102_v21, %v371_v14  ;;  %v297_v24 = vpop.f32.mrb[11].mxu0  ;;  %1174 = vmatprep.subr.bf16.mxu1 %v1516_v27 }
 0x161   :  { %v385_v32 = vadd.f32 %v369_v17, %v297_v24 }
 0x162   :  { %v414_v36 = vpack.c.bf16 %v387_v23, %v386_v22 }
 0x163   :  { %v413_v37 = vpack.c.bf16 %v385_v32, %v384_v31  ;;  %1182 = vmatpush3.bf16.msra.mxu1 %v1516_v27 }
 0x164   :  { %1175 = vmatprep.subr.bf16.mxu1 %v1520_v28 }
 0x165   :  { %v1105_v26 = vpop.f32.mrb[12].mxu0  ;;  %1131 = vmatprep.mubr.bf16.mxu1 %v413_v37 }
 0x166   :  { %v310_v42 = vpop.f32.mrb[13].mxu0  ;;  %1132 = vmatmul.mubr.bf16.gmra.mrb[8].mxu1 %v414_v36  ;;  %v390_v44 = vadd.f32 %v1105_v26, %v374_v38 }
 0x167   :  { %v1106_v43 = vpop.f32.mrb[14].mxu0  ;;  %1183 = vmatpush3.bf16.msra.mxu1 %v1520_v28  ;;  %v388_v46 = vadd.f32 %v372_v40, %v310_v42  ;;  %v891_v28 = vld [vmem:[%s1586_s5] ss:$0 sm:$0xff] }
 0x168   :  { %v391_v45 = vadd.f32 %v1106_v43, %v375_v39  ;;  %v313_v27 = vpop.f32.mrb[15].mxu0  ;;  %1176 = vmatprep.subr.bf16.mxu1 %v1524_v29 }
 0x169   :  { %v389_v47 = vadd.f32 %v373_v41, %v313_v27  ;;  %v900_v27 = vld [vmem:[%s1588_s7] ss:$0 sm:$0xff]  ;;  %s1374_s7 = smov [#allocation12]  }
 0x16a   :  { %v416_v48 = vpack.c.bf16 %v391_v45, %v390_v44  ;;  %s861_s25 = sshll.u32 %s1374_s7, 4  ;;  %s862_s25 = int_to_ptr.vmem [resolvable:$true] %s861_s25 }
 0x16b   :  { %v415_v49 = vpack.c.bf16 %v389_v47, %v388_v46  ;;  %1184 = vmatpush3.bf16.msra.mxu1 %v1524_v29  ;;  %s1337_s26 = scalar_lea.vmem %s862_s25, 1024  ;;  %p1342_p13 = scmp.lt.s32.totalorder %s862_s25, %s862_s25 }
 0x16c   :  { %1177 = vmatprep.subr.bf16.mxu1 %v1225_v50  ;;  %p1338_p12 = scmp.ne.s32.totalorder %s862_s25, %s1337_s26  ;;  %p1343_p0 = scmp.lt.s32.totalorder %s1337_s26, %s1337_s26 }
 0x16d   :  { %1135 = vmatprep.mubr.bf16.mxu1 %v415_v49 }
 0x16e   :  { %1136 = vmatmul.mubr.bf16.gmra.mrb[12].mxu1 %v416_v48  ;;  %p1344_p1 = por %p1343_p0, %p1342_p13 }
 0x16f   :  { %1185 = vmatpush3.bf16.msra.mxu1 %v1225_v50 }
 0x170   :  { %1178 = vmatprep.subr.bf16.mxu1 %v1226_v34  ;;  %p1345_p2 = pnand %p1344_p1, %p1338_p12 }
 0x173   :  { %1186 = vmatpush3.bf16.msra.mxu1 %v1226_v34 }
 0x229   :  { %v1125_v51 = vpop.f32.mrb[0].mxu1 }
 0x22a   :  { %v514_v52 = vadd.f32 %v1125_v51, %v891_v28  ;;  %v505_v53 = vpop.f32.mrb[1].mxu1 }
 0x22b   :  { %v506_v29 = vadd.f32 %v891_v28, %v505_v53  ;;  %v1126_v54 = vpop.f32.mrb[2].mxu1 }
 0x22c   :  { %v517_v55 = vadd.f32 %v1126_v54, %v891_v28  ;;  %v508_v56 = vpop.f32.mrb[3].mxu1  ;;  %v570_v58 = vmax.f32 %v514_v52, 0.0 }
 0x22d   :  { %v509_v57 = vadd.f32 %v891_v28, %v508_v56  ;;  %v568_v60 = vmax.f32 %v506_v29, 0.0 }
 0x22e   :  { %v571_v59 = vmax.f32 %v517_v55, 0.0 }
 0x22f   :  { %v569_v61 = vmax.f32 %v509_v57, 0.0 }
 0x230   :  { %v602_v62 = vpack.c.bf16 %v571_v59, %v570_v58 }
 0x231   :  { %v601_v63 = vpack.c.bf16 %v569_v61, %v568_v60  ;;  %v1129_v0 = vpop.f32.mrb[4].mxu1 }
 0x232   :  { %v530_v1 = vadd.f32 %v1129_v0, %v891_v28  ;;  %v521_v2 = vpop.f32.mrb[5].mxu1 }
 0x233   :  { %v522_v3 = vadd.f32 %v891_v28, %v521_v2  ;;  %v1130_v4 = vpop.f32.mrb[6].mxu1  ;;  %1155 = vmatprep.mubr.bf16.mxu0 %v601_v63 }
 0x234   :  { %v533_v5 = vadd.f32 %v1130_v4, %v891_v28  ;;  %v524_v6 = vpop.f32.mrb[7].mxu1  ;;  %1156 = vmatmul.mubr.bf16.vlgmr.msra.gmra.mrb[16].mxu0 %v602_v62  ;;  %v574_v8 = vmax.f32 %v530_v1, 0.0 }
 0x235   :  { %v525_v7 = vadd.f32 %v891_v28, %v524_v6  ;;  %v572_v10 = vmax.f32 %v522_v3, 0.0 }
 0x236   :  { %v575_v9 = vmax.f32 %v533_v5, 0.0 }
 0x237   :  { %v573_v11 = vmax.f32 %v525_v7, 0.0 }
 0x238   :  { %v604_v12 = vpack.c.bf16 %v575_v9, %v574_v8 }
 0x239   :  { %v603_v13 = vpack.c.bf16 %v573_v11, %v572_v10  ;;  %v1133_v14 = vpop.f32.mrb[8].mxu1 }
 0x23a   :  { %v546_v15 = vadd.f32 %v1133_v14, %v891_v28  ;;  %v537_v16 = vpop.f32.mrb[9].mxu1 }
 0x23b   :  { %v538_v17 = vadd.f32 %v891_v28, %v537_v16  ;;  %v1134_v18 = vpop.f32.mrb[10].mxu1  ;;  %1159 = vmatprep.mubr.bf16.mxu0 %v603_v13 }
 0x23c   :  { %v549_v19 = vadd.f32 %v1134_v18, %v891_v28  ;;  %v540_v20 = vpop.f32.mrb[11].mxu1  ;;  %1160 = vmatmul.mubr.bf16.gmra.mrb[20].mxu0 %v604_v12  ;;  %v578_v22 = vmax.f32 %v546_v15, 0.0 }
 0x23d   :  { %v541_v21 = vadd.f32 %v891_v28, %v540_v20  ;;  %v576_v24 = vmax.f32 %v538_v17, 0.0 }
 0x23e   :  { %v579_v23 = vmax.f32 %v549_v19, 0.0 }
 0x23f   :  { %v577_v25 = vmax.f32 %v541_v21, 0.0 }
 0x240   :  { %v606_v30 = vpack.c.bf16 %v579_v23, %v578_v22 }
 0x241   :  { %v605_v31 = vpack.c.bf16 %v577_v25, %v576_v24  ;;  %v1137_v32 = vpop.f32.mrb[12].mxu1 }
 0x242   :  { %v562_v33 = vadd.f32 %v1137_v32, %v891_v28  ;;  %v553_v35 = vpop.f32.mrb[13].mxu1 }
 0x243   :  { %v554_v36 = vadd.f32 %v891_v28, %v553_v35  ;;  %v1138_v37 = vpop.f32.mrb[14].mxu1  ;;  %1163 = vmatprep.mubr.bf16.mxu1 %v605_v31 }
 0x244   :  { %v565_v38 = vadd.f32 %v1138_v37, %v891_v28  ;;  %v556_v39 = vpop.f32.mrb[15].mxu1  ;;  %1164 = vmatmul.mubr.bf16.vlgmr.msra.gmra.mrb[16].mxu1 %v606_v30  ;;  %v582_v40 = vmax.f32 %v562_v33, 0.0 }
 0x245   :  { %v557_v26 = vadd.f32 %v891_v28, %v556_v39  ;;  %v580_v42 = vmax.f32 %v554_v36, 0.0 }
 0x246   :  { %v583_v41 = vmax.f32 %v565_v38, 0.0 }
 0x247   :  { %v581_v43 = vmax.f32 %v557_v26, 0.0 }
 0x248   :  { %v608_v44 = vpack.c.bf16 %v583_v41, %v582_v40 }
 0x249   :  { %v607_v45 = vpack.c.bf16 %v581_v43, %v580_v42 }
 0x24b   :  { %1167 = vmatprep.mubr.bf16.mxu1 %v607_v45 }
 0x24c   :  { %1168 = vmatmul.mubr.bf16.gmra.mrb[20].mxu1 %v608_v44 }
 0x307   :  { %v1157_v46 = vpop.f32.mrb[16].mxu0 }
 0x308   :  { %v706_v47 = vadd.f32 %v1157_v46, %v900_v27  ;;  %v697_v48 = vpop.f32.mrb[17].mxu0 }
 0x309   :  { %v698_v49 = vadd.f32 %v900_v27, %v697_v48  ;;  %v1158_v50 = vpop.f32.mrb[18].mxu0 }
 0x30a   :  { %v709_v34 = vadd.f32 %v1158_v50, %v900_v27  ;;  %v700_v51 = vpop.f32.mrb[19].mxu0  ;;  %v762_v52 = vmax.f32 %v706_v47, 0.0 }
 0x30b   :  { %v701_v28 = vadd.f32 %v900_v27, %v700_v51  ;;  %v760_v29 = vmax.f32 %v698_v49, 0.0 }
 0x30c   :  { %v763_v53 = vmax.f32 %v709_v34, 0.0 }
 0x30d   :  { %v761_v54 = vmax.f32 %v701_v28, 0.0 }
 0x30e   :  { %v981_v55 = vpack.c.bf16 %v763_v53, %v762_v52 }
 0x30f   :  { %v976_v56 = vpack.c.bf16 %v761_v54, %v760_v29  ;;  %v1161_v57 = vpop.f32.mrb[20].mxu0 }
 0x310   :  { %1020 = vst [vmem:[#allocation12 + $0x8] sm:$0xff] %v981_v55   ;;  %v722_v58 = vadd.f32 %v1161_v57, %v900_v27  ;;  %v713_v59 = vpop.f32.mrb[21].mxu0 }
 0x311   :  { %977 = vst [vmem:[#allocation12] sm:$0xff] %v976_v56   ;;  %v714_v60 = vadd.f32 %v900_v27, %v713_v59  ;;  %v1162_v61 = vpop.f32.mrb[22].mxu0 }
 0x312   :  { %v725_v62 = vadd.f32 %v1162_v61, %v900_v27  ;;  %v716_v63 = vpop.f32.mrb[23].mxu0  ;;  %v766_v1 = vmax.f32 %v722_v58, 0.0 }
 0x313   :  { %v717_v0 = vadd.f32 %v900_v27, %v716_v63  ;;  %v764_v3 = vmax.f32 %v714_v60, 0.0 }
 0x314   :  { %v767_v2 = vmax.f32 %v725_v62, 0.0 }
 0x315   :  { %v765_v4 = vmax.f32 %v717_v0, 0.0 }
 0x316   :  { %v991_v5 = vpack.c.bf16 %v767_v2, %v766_v1 }
 0x317   :  { %v986_v6 = vpack.c.bf16 %v765_v4, %v764_v3  ;;  %v1165_v7 = vpop.f32.mrb[16].mxu1 }
 0x318   :  { %1022 = vst [vmem:[#allocation12 + $0x18] sm:$0xff] %v991_v5   ;;  %v738_v8 = vadd.f32 %v1165_v7, %v900_v27  ;;  %v729_v9 = vpop.f32.mrb[17].mxu1 }
 0x319   :  { %1021 = vst [vmem:[#allocation12 + $0x10] sm:$0xff] %v986_v6   ;;  %v730_v10 = vadd.f32 %v900_v27, %v729_v9  ;;  %v1166_v11 = vpop.f32.mrb[18].mxu1 }
 0x31a   :  { %v741_v12 = vadd.f32 %v1166_v11, %v900_v27  ;;  %v732_v13 = vpop.f32.mrb[19].mxu1  ;;  %v770_v15 = vmax.f32 %v738_v8, 0.0 }
 0x31b   :  { %v733_v14 = vadd.f32 %v900_v27, %v732_v13  ;;  %v768_v17 = vmax.f32 %v730_v10, 0.0 }
 0x31c   :  { %v771_v16 = vmax.f32 %v741_v12, 0.0 }
 0x31d   :  { %v769_v18 = vmax.f32 %v733_v14, 0.0 }
 0x31e   :  { %v1001_v19 = vpack.c.bf16 %v771_v16, %v770_v15 }
 0x31f   :  { %v996_v20 = vpack.c.bf16 %v769_v18, %v768_v17  ;;  %v1169_v21 = vpop.f32.mrb[20].mxu1 }
 0x320   :  { %1024 = vst [vmem:[#allocation12 + $0x28] sm:$0xff] %v1001_v19   ;;  %v754_v22 = vadd.f32 %v1169_v21, %v900_v27  ;;  %v745_v23 = vpop.f32.mrb[21].mxu1 }
 0x321   :  { %1023 = vst [vmem:[#allocation12 + $0x20] sm:$0xff] %v996_v20   ;;  %v746_v24 = vadd.f32 %v900_v27, %v745_v23  ;;  %v1170_v25 = vpop.f32.mrb[22].mxu1 }
 0x322   :  { %v757_v30 = vadd.f32 %v1170_v25, %v900_v27  ;;  %v748_v31 = vpop.f32.mrb[23].mxu1  ;;  %v774_v33 = vmax.f32 %v754_v22, 0.0 }
 0x323   :  { %v749_v32 = vadd.f32 %v900_v27, %v748_v31  ;;  %v772_v36 = vmax.f32 %v746_v24, 0.0 }
 0x324   :  { %v775_v35 = vmax.f32 %v757_v30, 0.0 }
 0x325   :  { %v773_v37 = vmax.f32 %v749_v32, 0.0 }
 0x326   :  { %v1011_v38 = vpack.c.bf16 %v775_v35, %v774_v33 }
 0x327   :  { %v1006_v39 = vpack.c.bf16 %v773_v37, %v772_v36 }
 0x328   :  { %1026 = vst [vmem:[#allocation12 + $0x38] sm:$0xff] %v1011_v38  }
 0x329   :  { %1025 = vst [vmem:[#allocation12 + $0x30] sm:$0xff] %v1006_v39  }
 0x32a   :  { %1348 = shalt.err (!%p1345_p2)
}
 0x32b   :  { %s1349_s1 = scalar_lea.hbm %s1589_s8, 1024 }
 0x32c   :  { %p1350_p3 = scmp.ne.s32.totalorder %s1589_s8, %s1349_s1  ;;  %p1353_p4 = scmp.lt.u32.totalorder %s1349_s1, %s1589_s8 }
 0x32e   :  { %p1355_p5 = pnand %p1353_p4, %p1350_p3 }
 0x330   :  { %1358 = shalt.err (!%p1355_p5)
}
 0x331   :  { %867 = dma.vmem_to_hbm [thread:$0]  %s862_s25, 1024, %s1589_s8, [#allocation5], %s1369_s17, %s1369_s17, %s1370_s18  }
 0x332   :  { %1365 = dma.done.wait [#allocation5], 1024  }
 0x333   :  { %1366 = vsyncadd [#allocation5], 4294966272 }
 0x334   :  { %871 = vsyncpa [#allocation4], 1 }
 0x335   :  { %872 = vsyncpa [#allocation7], 1 }
 0x336   :  { %873 = vsyncpa [#allocation10], 1 }
 0x337   :  { %874 = vsyncpa [#allocation5], 1 }

</bundles_post_ra>
